<compile_context>
chip_gen: v6e
topology: v6e:2x2x1
jax: 0.10.0
libtpu: 0.0.40
codegen_flags: <defaults>
</compile_context>

<pallas_src>
import functools

import numpy as np

import jax
import jax.numpy as jnp
from jax.experimental import pallas as pl
from jax.experimental.pallas import tpu as pltpu


# 24 MiB plan for this kernel's VMEM blocks + an explicit 32 MiB scoped
# limit.  32 MiB is safe on every generation (v5e/v6e: 128 MiB physical,
# v7x: 64 MiB physical) and lifts v5e's 16 MiB default so the larger row
# tiles still compile there.
_VMEM_PLAN_BYTES = 24 * 1024 * 1024
_VMEM_LIMIT_BYTES = 32 * 1024 * 1024


def _round_up(x, m):
    return ((x + m - 1) // m) * m


def _patch_embed_kernel(p_ref, w_ref, prm_ref, o_ref, *, embed_dim):
    """One row-tile of  LayerNorm(patches @ W + b) * gamma + beta.

    p_ref   : (TM, K)      patch rows (K = C*p*p; need not be 128-aligned)
    w_ref   : (K, E_pad)   projection weight, zero in columns >= E
    prm_ref : (8, E_pad)   row0 = conv bias, row1 = LN gamma, row2 = LN beta
                           (all zero in columns >= E)
    o_ref   : (TM, E_pad)  lane-dense output; columns >= E come out as 0
    """
    x = jnp.dot(p_ref[...], w_ref[...], preferred_element_type=jnp.float32)
    x = x + prm_ref[0:1, :]                       # conv bias (0 in padded lanes)

    # Masked two-pass LayerNorm over the *true* embed_dim.  Columns >= E of x
    # are exactly zero (zero-padded weight columns + bias), so the mean only
    # sees real features; the variance masks the padded lanes explicitly
    # (after centering they hold -mean, which must not enter the sum).
    inv_e = 1.0 / float(embed_dim)
    mean = jnp.sum(x, axis=-1, keepdims=True) * inv_e
    d = x - mean
    lane = jax.lax.broadcasted_iota(jnp.int32, (1, x.shape[-1]), 1)
    var = jnp.sum(jnp.where(lane < embed_dim, d * d, 0.0),
                  axis=-1, keepdims=True) * inv_e
    xn = d * jax.lax.rsqrt(var + 1e-5)            # nn.LayerNorm default eps

    # gamma/beta are zero in padded lanes, so padded output lanes stay 0.
    o_ref[...] = (xn * prm_ref[1:2, :] + prm_ref[2:3, :]).astype(o_ref.dtype)


def _choose_row_tile(M, stream_bytes_per_row, resident_bytes):
    """Pick the row tile TM from the VMEM plan and megacore considerations."""
    M8 = _round_up(M, 8)
    budget = max(_VMEM_PLAN_BYTES - resident_bytes, 0)
    tm_budget = max(8, (budget // max(stream_bytes_per_row, 1)) // 8 * 8)
    tm = min(1024, M8, tm_budget)
    # v7x megacore: prefer >= 4 grid steps (>= 2 per TensorCore) when each
    # step still has >= 128 rows; otherwise >= 2 steps with >= 64 rows each.
    # (No-op on single-TC v5e/v6e beyond keeping the pipeline in steady state.)
    if M8 >= 4 * 128:
        tm = min(tm, _round_up(-(-M8 // 4), 8))
    elif M8 >= 2 * 64:
        tm = min(tm, _round_up(-(-M8 // 2), 8))
    return max(tm, 8)


def patch_embed_forward(x, conv_w, conv_b, ln_gamma, ln_beta, patch_size,
                        compute_dtype=jnp.bfloat16, out_dtype=None,
                        slice_output=True):
    """PatchEmbed.forward:  x: (B, C, H, W) -> (y, (Hp, Wp)), y: (B, N, E).

    compute_dtype: dtype of the matmul operands streamed through the MXU
                   (default bf16; accumulation and LayerNorm stay f32).
    out_dtype:     output dtype (default x.dtype).
    slice_output:  if False, return the zero-padded (B, N, E_pad) layout and
                   skip the final slice pass (consumer reads padded lanes as 0).
    """
    B, C, H, W = x.shape
    p = patch_size
    assert H % p == 0 and W % p == 0, "img_size must be divisible by patch_size"
    Hp, Wp = H // p, W // p
    N = Hp * Wp
    E = conv_w.shape[0]
    K = C * p * p
    M = B * N
    E_pad = _round_up(E, 128)

    cdt = np.dtype(compute_dtype if compute_dtype is not None else x.dtype)
    odt = np.dtype(out_dtype if out_dtype is not None else x.dtype)
    in_bytes, out_bytes = cdt.itemsize, odt.itemsize

    # ---- VMEM plan (includes resident weight + params, real dtype sizes). ----
    # Weight/params are accounted double-buffered even though we request
    # Buffered(1), so the plan stays valid on the fallback path.
    resident_bytes = 2 * K * E_pad * in_bytes + 2 * 8 * E_pad * 4
    stream_bytes_per_row = 2 * (K * in_bytes + E_pad * out_bytes)
    TM = _choose_row_tile(M, stream_bytes_per_row, resident_bytes)
    grid = -(-M // TM)                       # cdiv; last block may be partial

    # ---- Glue (XLA): cast + patchify in (c, kh, kw) order, matching the ----
    # flattened Conv2d(kernel=stride=patch) weight.  allow_input_fusion lets
    # XLA fuse this transpose directly into the pallas_call input under jit.
    # TODO(synk): a fully in-kernel patchify (reshape x to (B,C,Hp,p,Wp,p)
    # and relayout per row tile) would drop this pass even without fusion,
    # but the 6-D in-kernel relayout is not worth the lowering risk here.
    patches = x.astype(cdt).reshape(B, C, Hp, p, Wp, p)
    patches = patches.transpose(0, 2, 4, 1, 3, 5).reshape(M, K)

    # Conv weight flattened so conv == patches @ w_mat + b; only the E (lane)
    # dim is padded -- K needs no padding since the block covers the full dim.
    w_mat = conv_w.reshape(E, K).T.astype(cdt)                     # (K, E)
    w_mat = jnp.pad(w_mat, ((0, 0), (0, E_pad - E)))

    # Fused (8, E_pad) parameter block: bias / gamma / beta (zero-padded lanes
    # keep the padded output lanes exactly zero after the gamma multiply).
    params = jnp.zeros((8, E_pad), jnp.float32)
    params = params.at[0, :E].set(conv_b.astype(jnp.float32))
    params = params.at[1, :E].set(ln_gamma.astype(jnp.float32))
    params = params.at[2, :E].set(ln_beta.astype(jnp.float32))

    kernel = functools.partial(_patch_embed_kernel, embed_dim=E)
    cost = pl.CostEstimate(
        flops=2 * M * K * E_pad + 8 * M * E_pad,
        transcendentals=M,
        bytes_accessed=(M * K * in_bytes + K * E_pad * in_bytes
                        + 8 * E_pad * 4 + M * E_pad * out_bytes))

    def _call(single_buffer_consts):
        def const_spec(shape):
            # Grid-invariant operands: single-buffer them (constant index_map,
            # double buffering only wastes VMEM -- matters most on v7x).
            if single_buffer_consts:
                return pl.BlockSpec(shape, lambda i: (0, 0),
                                    pipeline_mode=pl.Buffered(1))
            return pl.BlockSpec(shape, lambda i: (0, 0))

        return pl.pallas_call(
            kernel,
            out_shape=jax.ShapeDtypeStruct((M, E_pad), odt),
            grid_spec=pltpu.PrefetchScalarGridSpec(
                num_scalar_prefetch=0,
                grid=(grid,),
                in_specs=[
                    pl.BlockSpec((TM, K), lambda i: (i, 0)),
                    const_spec((K, E_pad)),
                    const_spec((8, E_pad)),
                ],
                out_specs=pl.BlockSpec((TM, E_pad), lambda i: (i, 0)),
            ),
            compiler_params=pltpu.CompilerParams(
                dimension_semantics=("parallel",),
                vmem_limit_bytes=_VMEM_LIMIT_BYTES,
                allow_input_fusion=[True, False, False]),
            cost_estimate=cost,
        )(patches, w_mat, params)

    try:
        y = _call(True)
    except Exception:
        # pipeline_mode=pl.Buffered(1) not supported by this jax build; fall
        # back to default double-buffering of the grid-invariant operands.
        y = _call(False)

    if slice_output and E_pad != E:
        # TODO(synk): consumers that can read the zero-padded (.., E_pad)
        # layout directly should pass slice_output=False to skip this pass.
        y = y[:, :E]
    y = y.reshape(B, N, y.shape[-1])
    return y, (Hp, Wp)


if __name__ == "__main__":
    # Small shapes consistent with the module:
    # img_size=16, patch_size=4, in_chans=4, embed_dim=32.
    B, C, H, W = 2, 4, 16, 16
    p = 4
    E = 32

    key = jax.random.PRNGKey(0)
    kx, kw, kb = jax.random.split(key, 3)
    x = jax.random.normal(kx, (B, C, H, W), dtype=jnp.float32)
    conv_w = jax.random.normal(kw, (E, C, p, p), dtype=jnp.float32) * 0.02
    conv_b = jax.random.normal(kb, (E,), dtype=jnp.float32) * 0.02
    ln_gamma = jnp.ones((E,), dtype=jnp.float32)
    ln_beta = jnp.zeros((E,), dtype=jnp.float32)

    Hp, Wp = H // p, W // p

    # Pure-JAX reference: patchify @ flattened conv weight + bias, LayerNorm.
    ref_patches = x.reshape(B, C, Hp, p, Wp, p).transpose(0, 2, 4, 1, 3, 5)
    ref_patches = ref_patches.reshape(B * Hp * Wp, C * p * p)
    ref = jnp.dot(ref_patches, conv_w.reshape(E, -1).T,
                  precision=jax.lax.Precision.HIGHEST) + conv_b
    mu = ref.mean(-1, keepdims=True)
    var = ((ref - mu) ** 2).mean(-1, keepdims=True)
    ref = (ref - mu) * jax.lax.rsqrt(var + 1e-5) * ln_gamma + ln_beta
    ref = ref.reshape(B, Hp * Wp, E)

    # Default path: bf16 matmul operands, f32 accumulation / LN / output.
    y, (hp, wp) = patch_embed_forward(x, conv_w, conv_b, ln_gamma, ln_beta, p)
    y = jax.block_until_ready(y)
    assert y.shape == (B, Hp * Wp, E)
    assert (hp, wp) == (Hp, Wp)
    err_bf16 = float(jnp.max(jnp.abs(y - ref)))
    assert err_bf16 < 6e-2, f"bf16-operand max abs err {err_bf16}"

    # Full-f32 operand path: tighter correctness check.
    y32, _ = patch_embed_forward(x, conv_w, conv_b, ln_gamma, ln_beta, p,
                                 compute_dtype=jnp.float32)
    y32 = jax.block_until_ready(y32)
    err_f32 = float(jnp.max(jnp.abs(y32 - ref)))
    assert err_f32 < 2e-2, f"f32-operand max abs err {err_f32}"

    print("KERNEL_OK")
</pallas_src>

<mosaic_0001>
module attributes {stable_mosaic.version = 11 : i64} {
  func.func @_patch_embed_kernel(%arg0: i32, %arg1: memref<32x64xbf16, #tpu.memory_space<vmem>>, %arg2: memref<64x128xbf16, #tpu.memory_space<vmem>>, %arg3: memref<8x128xf32, #tpu.memory_space<vmem>>, %arg4: memref<32x128xf32, #tpu.memory_space<vmem>>) attributes {dimension_semantics = [#tpu.dimension_semantics<parallel>], iteration_bounds = array<i64: 1>, scalar_prefetch = 0 : i64, scratch_operands = 0 : i64, tpu.core_type = #tpu.core_type<tc>, window_params = [{transform_indices = @transform_0, window_bounds = array<i64: 32, 64>}, {pipeline_mode = #tpu.pipeline_mode<synchronous>, transform_indices = @transform_1, window_bounds = array<i64: 64, 128>}, {pipeline_mode = #tpu.pipeline_mode<synchronous>, transform_indices = @transform_2, window_bounds = array<i64: 8, 128>}, {transform_indices = @transform_3, window_bounds = array<i64: 32, 128>}]} {
    %c0 = arith.constant 0 : index
    %c0_0 = arith.constant 0 : index
    %0 = vector.load %arg1[%c0, %c0_0] : memref<32x64xbf16, #tpu.memory_space<vmem>>, vector<32x64xbf16>
    %c0_1 = arith.constant 0 : index
    %c0_2 = arith.constant 0 : index
    %1 = vector.load %arg2[%c0_1, %c0_2] : memref<64x128xbf16, #tpu.memory_space<vmem>>, vector<64x128xbf16>
    %cst = arith.constant dense<0.000000e+00> : vector<32x128xf32>
    %2 = tpu.matmul %0, %1, %cst {dimension_numbers = #tpu.dot_dimension_numbers<[1], [0], [0], [1], [0, 0, 1, 1], [], []>} : vector<32x64xbf16>, vector<64x128xbf16>, vector<32x128xf32> -> vector<32x128xf32>
    %c0_3 = arith.constant 0 : index
    %c0_4 = arith.constant 0 : index
    %3 = vector.load %arg3[%c0_3, %c0_4] : memref<8x128xf32, #tpu.memory_space<vmem>>, vector<1x128xf32>
    %4 = vector.broadcast %3 : vector<1x128xf32> to vector<32x128xf32>
    %5 = arith.addf %2, %4 : vector<32x128xf32>
    %cst_5 = arith.constant dense<0.000000e+00> : vector<32xf32>
    %6 = vector.multi_reduction <add>, %5, %cst_5 [1] : vector<32x128xf32> to vector<32xf32>
    %7 = vector.shape_cast %6 : vector<32xf32> to vector<32x1xf32>
    %cst_6 = arith.constant 3.125000e-02 : f32
    %8 = vector.broadcast %cst_6 : f32 to vector<32x1xf32>
    %9 = arith.mulf %7, %8 : vector<32x1xf32>
    %10 = vector.broadcast %9 : vector<32x1xf32> to vector<32x128xf32>
    %11 = arith.subf %5, %10 : vector<32x128xf32>
    %12 = tpu.iota {dimensions = array<i32: 1>} : vector<1x128xi32>
    %c32_i32 = arith.constant 32 : i32
    %13 = vector.broadcast %c32_i32 : i32 to vector<1x128xi32>
    %14 = arith.cmpi slt, %12, %13 : vector<1x128xi32>
    %15 = arith.mulf %11, %11 : vector<32x128xf32>
    %cst_7 = arith.constant 0.000000e+00 : f32
    %16 = vector.shape_cast %14 : vector<1x128xi1> to vector<1x128xi1>
    %17 = vector.broadcast %16 : vector<1x128xi1> to vector<32x128xi1>
    %18 = vector.broadcast %cst_7 : f32 to vector<32x128xf32>
    %19 = arith.select %17, %15, %18 : vector<32x128xi1>, vector<32x128xf32>
    %cst_8 = arith.constant dense<0.000000e+00> : vector<32xf32>
    %20 = vector.multi_reduction <add>, %19, %cst_8 [1] : vector<32x128xf32> to vector<32xf32>
    %21 = vector.shape_cast %20 : vector<32xf32> to vector<32x1xf32>
    %cst_9 = arith.constant 3.125000e-02 : f32
    %22 = vector.broadcast %cst_9 : f32 to vector<32x1xf32>
    %23 = arith.mulf %21, %22 : vector<32x1xf32>
    %cst_10 = arith.constant 9.99999974E-6 : f32
    %24 = vector.broadcast %cst_10 : f32 to vector<32x1xf32>
    %25 = arith.addf %23, %24 : vector<32x1xf32>
    %26 = math.rsqrt %25 : vector<32x1xf32>
    %27 = vector.broadcast %26 : vector<32x1xf32> to vector<32x128xf32>
    %28 = arith.mulf %11, %27 : vector<32x128xf32>
    %c1 = arith.constant 1 : index
    %c0_11 = arith.constant 0 : index
    %29 = vector.load %arg3[%c1, %c0_11] : memref<8x128xf32, #tpu.memory_space<vmem>>, vector<1x128xf32>
    %30 = vector.broadcast %29 : vector<1x128xf32> to vector<32x128xf32>
    %31 = arith.mulf %28, %30 : vector<32x128xf32>
    %c2 = arith.constant 2 : index
    %c0_12 = arith.constant 0 : index
    %32 = vector.load %arg3[%c2, %c0_12] : memref<8x128xf32, #tpu.memory_space<vmem>>, vector<1x128xf32>
    %33 = vector.broadcast %32 : vector<1x128xf32> to vector<32x128xf32>
    %34 = arith.addf %31, %33 : vector<32x128xf32>
    %c0_13 = arith.constant 0 : index
    %c0_14 = arith.constant 0 : index
    %35 = vector.load %arg4[%c0_13, %c0_14] : memref<32x128xf32, #tpu.memory_space<vmem>>, vector<32x128xf32>
    tpu.vector_store %arg4[%c0_13, %c0_14], %34 {strides = array<i32>} : memref<32x128xf32, #tpu.memory_space<vmem>>, vector<32x128xf32>,
    return
  }
  func.func @transform_0(%arg0: i32) -> (i32, i32) {
    %c0_i32 = arith.constant 0 : i32
    %c0_i32_0 = arith.constant 0 : i32
    return %arg0, %c0_i32 : i32, i32
  }
  func.func @transform_1(%arg0: i32) -> (i32, i32) {
    %c0_i32 = arith.constant 0 : i32
    %c0_i32_0 = arith.constant 0 : i32
    %c0_i32_1 = arith.constant 0 : i32
    return %c0_i32, %c0_i32_0 : i32, i32
  }
  func.func @transform_2(%arg0: i32) -> (i32, i32) {
    %c0_i32 = arith.constant 0 : i32
    %c0_i32_0 = arith.constant 0 : i32
    %c0_i32_1 = arith.constant 0 : i32
    return %c0_i32, %c0_i32_0 : i32, i32
  }
  func.func @transform_3(%arg0: i32) -> (i32, i32) {
    %c0_i32 = arith.constant 0 : i32
    %c0_i32_0 = arith.constant 0 : i32
    return %arg0, %c0_i32 : i32, i32
  }
}

module attributes {stable_mosaic.version = 11 : i64} {
  func.func @_patch_embed_kernel(%arg0: i32, %arg1: memref<32x64xbf16, #tpu.memory_space<vmem>>, %arg2: memref<64x128xbf16, #tpu.memory_space<vmem>>, %arg3: memref<8x128xf32, #tpu.memory_space<vmem>>, %arg4: memref<32x128xf32, #tpu.memory_space<vmem>>) attributes {dimension_semantics = [#tpu.dimension_semantics<parallel>], iteration_bounds = array<i64: 1>, scalar_prefetch = 0 : i64, scratch_operands = 0 : i64, tpu.core_type = #tpu.core_type<tc>, window_params = [{transform_indices = @transform_0, window_bounds = array<i64: 32, 64>}, {pipeline_mode = #tpu.pipeline_mode<synchronous>, transform_indices = @transform_1, window_bounds = array<i64: 64, 128>}, {pipeline_mode = #tpu.pipeline_mode<synchronous>, transform_indices = @transform_2, window_bounds = array<i64: 8, 128>}, {transform_indices = @transform_3, window_bounds = array<i64: 32, 128>}]} {
    %c0 = arith.constant 0 : index
    %c0_0 = arith.constant 0 : index
    %0 = vector.load %arg1[%c0, %c0_0] : memref<32x64xbf16, #tpu.memory_space<vmem>>, vector<32x64xbf16>
    %c0_1 = arith.constant 0 : index
    %c0_2 = arith.constant 0 : index
    %1 = vector.load %arg2[%c0_1, %c0_2] : memref<64x128xbf16, #tpu.memory_space<vmem>>, vector<64x128xbf16>
    %cst = arith.constant dense<0.000000e+00> : vector<32x128xf32>
    %2 = tpu.matmul %0, %1, %cst {dimension_numbers = #tpu.dot_dimension_numbers<[1], [0], [0], [1], [0, 0, 1, 1], [], []>} : vector<32x64xbf16>, vector<64x128xbf16>, vector<32x128xf32> -> vector<32x128xf32>
    %c0_3 = arith.constant 0 : index
    %c0_4 = arith.constant 0 : index
    %3 = vector.load %arg3[%c0_3, %c0_4] : memref<8x128xf32, #tpu.memory_space<vmem>>, vector<1x128xf32>
    %4 = vector.broadcast %3 : vector<1x128xf32> to vector<32x128xf32>
    %5 = arith.addf %2, %4 : vector<32x128xf32>
    %cst_5 = arith.constant dense<0.000000e+00> : vector<32xf32>
    %6 = vector.multi_reduction <add>, %5, %cst_5 [1] : vector<32x128xf32> to vector<32xf32>
    %7 = vector.shape_cast %6 : vector<32xf32> to vector<32x1xf32>
    %cst_6 = arith.constant 3.125000e-02 : f32
    %8 = vector.broadcast %cst_6 : f32 to vector<32x1xf32>
    %9 = arith.mulf %7, %8 : vector<32x1xf32>
    %10 = vector.broadcast %9 : vector<32x1xf32> to vector<32x128xf32>
    %11 = arith.subf %5, %10 : vector<32x128xf32>
    %12 = tpu.iota {dimensions = array<i32: 1>} : vector<1x128xi32>
    %c32_i32 = arith.constant 32 : i32
    %13 = vector.broadcast %c32_i32 : i32 to vector<1x128xi32>
    %14 = arith.cmpi slt, %12, %13 : vector<1x128xi32>
    %15 = arith.mulf %11, %11 : vector<32x128xf32>
    %cst_7 = arith.constant 0.000000e+00 : f32
    %16 = vector.shape_cast %14 : vector<1x128xi1> to vector<1x128xi1>
    %17 = vector.broadcast %16 : vector<1x128xi1> to vector<32x128xi1>
    %18 = vector.broadcast %cst_7 : f32 to vector<32x128xf32>
    %19 = arith.select %17, %15, %18 : vector<32x128xi1>, vector<32x128xf32>
    %cst_8 = arith.constant dense<0.000000e+00> : vector<32xf32>
    %20 = vector.multi_reduction <add>, %19, %cst_8 [1] : vector<32x128xf32> to vector<32xf32>
    %21 = vector.shape_cast %20 : vector<32xf32> to vector<32x1xf32>
    %cst_9 = arith.constant 3.125000e-02 : f32
    %22 = vector.broadcast %cst_9 : f32 to vector<32x1xf32>
    %23 = arith.mulf %21, %22 : vector<32x1xf32>
    %cst_10 = arith.constant 9.99999974E-6 : f32
    %24 = vector.broadcast %cst_10 : f32 to vector<32x1xf32>
    %25 = arith.addf %23, %24 : vector<32x1xf32>
    %26 = math.rsqrt %25 : vector<32x1xf32>
    %27 = vector.broadcast %26 : vector<32x1xf32> to vector<32x128xf32>
    %28 = arith.mulf %11, %27 : vector<32x128xf32>
    %c1 = arith.constant 1 : index
    %c0_11 = arith.constant 0 : index
    %29 = vector.load %arg3[%c1, %c0_11] : memref<8x128xf32, #tpu.memory_space<vmem>>, vector<1x128xf32>
    %30 = vector.broadcast %29 : vector<1x128xf32> to vector<32x128xf32>
    %31 = arith.mulf %28, %30 : vector<32x128xf32>
    %c2 = arith.constant 2 : index
    %c0_12 = arith.constant 0 : index
    %32 = vector.load %arg3[%c2, %c0_12] : memref<8x128xf32, #tpu.memory_space<vmem>>, vector<1x128xf32>
    %33 = vector.broadcast %32 : vector<1x128xf32> to vector<32x128xf32>
    %34 = arith.addf %31, %33 : vector<32x128xf32>
    %c0_13 = arith.constant 0 : index
    %c0_14 = arith.constant 0 : index
    %35 = vector.load %arg4[%c0_13, %c0_14] : memref<32x128xf32, #tpu.memory_space<vmem>>, vector<32x128xf32>
    tpu.vector_store %arg4[%c0_13, %c0_14], %34 {strides = array<i32>} : memref<32x128xf32, #tpu.memory_space<vmem>>, vector<32x128xf32>,
    return
  }
  func.func @transform_0(%arg0: i32) -> (i32, i32) {
    %c0_i32 = arith.constant 0 : i32
    %c0_i32_0 = arith.constant 0 : i32
    return %arg0, %c0_i32 : i32, i32
  }
  func.func @transform_1(%arg0: i32) -> (i32, i32) {
    %c0_i32 = arith.constant 0 : i32
    %c0_i32_0 = arith.constant 0 : i32
    %c0_i32_1 = arith.constant 0 : i32
    return %c0_i32, %c0_i32_0 : i32, i32
  }
  func.func @transform_2(%arg0: i32) -> (i32, i32) {
    %c0_i32 = arith.constant 0 : i32
    %c0_i32_0 = arith.constant 0 : i32
    %c0_i32_1 = arith.constant 0 : i32
    return %c0_i32, %c0_i32_0 : i32, i32
  }
  func.func @transform_3(%arg0: i32) -> (i32, i32) {
    %c0_i32 = arith.constant 0 : i32
    %c0_i32_0 = arith.constant 0 : i32
    return %arg0, %c0_i32 : i32, i32
  }
}

</mosaic_0001>

<bundles_post_ra>
// kernel: tpu_custom_call.1
= control target key start
LH: loop header
LB: loop body
LE: loop exit
PB: predicated region body
PF: predicated region fallthrough
CT: control target
= control target key end

     0   :  { %8 = vsyncpa [#allocation3], 0  ;;  %s432_s0 = inlined_call_operand.hbm [shape: bf16[32,64], index: 0, kind: input, shape index: {}]   ;;  %s433_s1 = inlined_call_operand.hbm [shape: bf16[64,128], index: 1, kind: input, shape index: {}]   ;;  %s434_s2 = inlined_call_operand.hbm [shape: f32[8,128], index: 2, kind: input, shape index: {}]   ;;  %s435_s3 = inlined_call_operand.hbm [shape: f32[32,128], index: 3, kind: output, shape index: {}]  }
   0x1   :  { %9 = vsyncpa [#allocation6], 0 }
   0x2   :  { %10 = vsyncpa [#allocation4], 0  ;;  %s392_s12 = smov [#allocation5]   ;;  %s393_s14 = smov [#allocation2]  }
   0x3   :  { %s28_s13 = sshll.u32 %s392_s12, 4  ;;  %s16_s15 = sshll.u32 %s393_s14, 4  ;;  %s29_s13 = int_to_ptr.vmem [resolvable:$true] %s28_s13  ;;  %s17_s15 = int_to_ptr.vmem [resolvable:$true] %s16_s15 }
   0x4   :  { %s314_s16 = scalar_lea.vmem %s29_s13, 512  ;;  %p319_p1 = scmp.lt.s32.totalorder %s29_s13, %s29_s13 }
   0x5   :  { %p315_p0 = scmp.ne.s32.totalorder %s29_s13, %s314_s16  ;;  %p320_p2 = scmp.lt.s32.totalorder %s314_s16, %s314_s16 }
   0x7   :  { %p321_p3 = por %p320_p2, %p319_p1 }
   0x9   :  { %p322_p4 = pnand %p321_p3, %p315_p0 }
   0xb   :  { %325 = shalt.err (!%p322_p4)
}
   0xc   :  { %s394_s17 = smov 64   ;;  %s395_s18 = smov 4  }
   0xd   :  { %34 = dma.hbm_to_vmem [thread:$0]  %s433_s1, 512, %s29_s13, [#allocation6], %s394_s17, %s394_s17, %s395_s18  }
   0xe   :  { %s334_s21 = scalar_lea.vmem %s17_s15, 256  ;;  %p339_p6 = scmp.lt.s32.totalorder %s17_s15, %s17_s15 }
   0xf   :  { %p335_p5 = scmp.ne.s32.totalorder %s17_s15, %s334_s21  ;;  %p340_p7 = scmp.lt.s32.totalorder %s334_s21, %s334_s21 }
  0x11   :  { %p341_p8 = por %p340_p7, %p339_p6 }
  0x13   :  { %p342_p9 = pnand %p341_p8, %p335_p5 }
  0x15   :  { %345 = shalt.err (!%p342_p9)
}
  0x16   :  { %22 = dma.hbm_to_vmem [thread:$0]  %s432_s0, 256, %s17_s15, [#allocation3], %s394_s17, %s394_s17, %s395_s18  }
  0x17   :  { %s396_s24 = smov [#allocation7]  }
  0x18   :  { %s41_s25 = sshll.u32 %s396_s24, 4  ;;  %s42_s25 = int_to_ptr.vmem [resolvable:$true] %s41_s25 }
  0x19   :  { %s354_s26 = scalar_lea.vmem %s42_s25, 128  ;;  %p359_p11 = scmp.lt.s32.totalorder %s42_s25, %s42_s25 }
  0x1a   :  { %p355_p10 = scmp.ne.s32.totalorder %s42_s25, %s354_s26  ;;  %p360_p12 = scmp.lt.s32.totalorder %s354_s26, %s354_s26 }
  0x1c   :  { %p361_p13 = por %p360_p12, %p359_p11 }
  0x1e   :  { %p362_p0 = pnand %p361_p13, %p355_p10 }
  0x20   :  { %365 = shalt.err (!%p362_p0)
}
  0x21   :  { %44 = dma.hbm_to_vmem [thread:$0]  %s434_s2, 128, %s42_s25, [#allocation6]  }
  0x22   :  { %386 = dma.done.wait [#allocation3], 256  }
  0x23   :  { %387 = vsyncadd [#allocation3], 4294967040 }
  0x24   :  { %388 = dma.done.wait [#allocation6], 640  }
  0x25   :  { %389 = vsyncadd [#allocation6], 4294966656  ;;  %v292_v0 = vld [vmem:[#allocation5 + $0x18] sm:$0xff]   ;;  %v293_v1 = vld [vmem:[#allocation5 + $0x10] sm:$0xff]   ;;  %vm106_vm0 = vcmask 523264   ;;  %v178_v16 = vlaneseq  ;;  %s397_s0 = smov [#allocation8]  }
  0x26   :  { %272 = vmatprep.subr.bf16.mxu0 %v292_v0  ;;  %v294_v2 = vld [vmem:[#allocation5 + $0x8] sm:$0xff]   ;;  %v296_v3 = vld [vmem:[#allocation2] sm:$0xff]   ;;  %v295_v4 = vld [vmem:[#allocation5] sm:$0xff]   ;;  %s242_s2 = sshll.u32 %s397_s0, 4  ;;  %s243_s2 = int_to_ptr.vmem [resolvable:$true] %s242_s2 }
  0x27   :  { %273 = vmatpush3.bf16.msra.mxu0 %v292_v0  ;;  %280 = vmatprep.mubr.msk.bf16.mxu0 %vm106_vm0, %v296_v3  ;;  %v297_v5 = vld [vmem:[#allocation2 + $0x8] sm:$0xff]   ;;  %v255_v6 = vld [vmem:[#allocation7] ss:$0 sm:$0xff]  ;;  %v179_v21 = vand.u32 127, %v178_v16  ;;  %v264_v50 = vld [vmem:[#allocation7 + $0x1] ss:$0 sm:$0xff]  ;;  %p371_p2 = scmp.lt.s32.totalorder %s243_s2, %s243_s2 }
  0x28   :  { %274 = vmatprep.subr.bf16.mxu0 %v293_v1  ;;  %v265_v52 = vld [vmem:[#allocation7 + $0x2] ss:$0 sm:$0xff]  ;;  %s366_s28 = scalar_lea.vmem %s243_s2, 512 }
  0x29   :  { %vm180_vm1 = vcmp.lt.s32.totalorder %v179_v21, 32  ;;  %p367_p1 = scmp.ne.s32.totalorder %s243_s2, %s366_s28  ;;  %p372_p3 = scmp.lt.s32.totalorder %s366_s28, %s366_s28 }
  0x2b   :  { %275 = vmatpush3.bf16.msra.mxu0 %v293_v1  ;;  %p373_p4 = por %p372_p3, %p371_p2 }
  0x2c   :  { %276 = vmatprep.subr.bf16.mxu0 %v294_v2 }
  0x2d   :  { %p374_p5 = pnand %p373_p4, %p367_p1 }
  0x2f   :  { %277 = vmatpush3.bf16.msra.mxu0 %v294_v2 }
  0x30   :  { %278 = vmatprep.subr.bf16.mxu0 %v295_v4 }
  0x33   :  { %279 = vmatpush3.bf16.msra.mxu0 %v295_v4 }
  0x36   :  { %281 = vmatmul.mubr.msk.bf16.vlgmr.msra.gmra.mxu0 %vm106_vm0, %v297_v5 }
  0xf6   :  { %v282_v7 = vpop.f32.mrf.mxu0 }
  0xf7   :  { %v156_v8 = vadd.f32 %v282_v7, %v255_v6 }
  0xf8   :  { %v147_v9 = vpop.f32.mrf.mxu0 }
  0xf9   :  { %v148_v10 = vadd.f32 %v255_v6, %v147_v9  ;;  %166 = vadd.xlane.f32.xlu1 %v156_v8 }
  0xfa   :  { %v283_v11 = vpop.f32.mrf.mxu0 }
  0xfb   :  { %v159_v12 = vadd.f32 %v283_v11, %v255_v6  ;;  %162 = vadd.xlane.f32.xlu0 %v148_v10 }
  0xfc   :  { %v150_v13 = vpop.f32.mrf.mxu0 }
  0xfd   :  { %v151_v14 = vadd.f32 %v255_v6, %v150_v13  ;;  %168 = vadd.xlane.f32.xlu1 %v159_v12 }
  0xff   :  { %164 = vadd.xlane.f32.xlu0 %v151_v14 }
 0x182   :  { %v167_v15 = vpop.xlane.xlu1 %166 }
 0x183   :  { %v172_v17 = vmul.f32 0.03125, %v167_v15 }
 0x184   :  { %v163_v18 = vpop.xlane.xlu0 %162 }
 0x185   :  { %v170_v19 = vmul.f32 0.03125, %v163_v18  ;;  %v176_v22 = vsub.f32 %v156_v8, %v172_v17 }
 0x186   :  { %v169_v20 = vpop.xlane.xlu1 %168 }
 0x187   :  { %v174_v23 = vsub.f32 %v148_v10, %v170_v19  ;;  %v173_v24 = vmul.f32 0.03125, %v169_v20  ;;  %v183_v31 = vmul.f32 %v176_v22, %v176_v22 }
 0x188   :  { %v165_v25 = vpop.xlane.xlu0 %164 }
 0x189   :  { %v171_v26 = vmul.f32 0.03125, %v165_v25  ;;  %v181_v27 = vmul.f32 %v174_v23, %v174_v23  ;;  %v177_v28 = vsub.f32 %v159_v12, %v173_v24  ;;  %v189_v33 = vsel %vm180_vm1, %v183_v31, 0.0 }
 0x18b   :  { %v175_v29 = vsub.f32 %v151_v14, %v171_v26  ;;  %v187_v30 = vsel %vm180_vm1, %v181_v27, 0.0  ;;  %v184_v35 = vmul.f32 %v177_v28, %v177_v28 }
 0x18c   :  { %191 = vadd.xlane.f32.xlu0 %v187_v30 }
 0x18d   :  { %v182_v32 = vmul.f32 %v175_v29, %v175_v29  ;;  %v190_v36 = vsel %vm180_vm1, %v184_v35, 0.0 }
 0x18f   :  { %v188_v34 = vsel %vm180_vm1, %v182_v32, 0.0 }
 0x190   :  { %195 = vadd.xlane.f32.xlu0 %v189_v33  ;;  %193 = vadd.xlane.f32.xlu1 %v188_v34 }
 0x194   :  { %197 = vadd.xlane.f32.xlu1 %v190_v36 }
 0x215   :  { %v192_v37 = vpop.xlane.xlu0 %191 }
 0x216   :  { %v199_v38 = vmul.f32 0.03125, %v192_v37 }
 0x218   :  { %v203_v39 = vadd.f32 1e-05, %v199_v38 }
 0x219   :  { %v194_v40 = vpop.xlane.xlu1 %193  ;;  %v196_v41 = vpop.xlane.xlu0 %195 }
 0x21a   :  { %298 = vrsqrt.f32 %v203_v39  ;;  %v200_v42 = vmul.f32 0.03125, %v194_v40  ;;  %v201_v43 = vmul.f32 0.03125, %v196_v41 }
 0x21c   :  { %v204_v44 = vadd.f32 1e-05, %v200_v42  ;;  %v205_v45 = vadd.f32 1e-05, %v201_v43 }
 0x21d   :  { %v198_v46 = vpop.xlane.xlu1 %197 }
 0x21e   :  { %300 = vrsqrt.f32 %v204_v44  ;;  %v202_v47 = vmul.f32 0.03125, %v198_v46 }
 0x21f   :  { %302 = vrsqrt.f32 %v205_v45 }
 0x220   :  { %v206_v48 = vadd.f32 1e-05, %v202_v47 }
 0x222   :  { %304 = vrsqrt.f32 %v206_v48 }
 0x227   :  { %v299_v49 = vpop.eup %298 }
 0x228   :  { %v211_v51 = vmul.f32 %v299_v49, %v174_v23 }
 0x22a   :  { %v220_v53 = vmul.f32 %v264_v50, %v211_v51 }
 0x22b   :  { %v301_v54 = vpop.eup %300 }
 0x22c   :  { %v303_v55 = vpop.eup %302  ;;  %v212_v56 = vmul.f32 %v301_v54, %v175_v29  ;;  %v229_v57 = vadd.f32 %v265_v52, %v220_v53 }
 0x22d   :  { %v213_v58 = vmul.f32 %v303_v55, %v176_v22 }
 0x22e   :  { %v221_v59 = vmul.f32 %v264_v50, %v212_v56  ;;  %233 = vst [vmem:[#allocation8] sm:$0xff] %v229_v57 }
 0x22f   :  { %v305_v60 = vpop.eup %304  ;;  %v222_v61 = vmul.f32 %v264_v50, %v213_v58 }
 0x230   :  { %v214_v62 = vmul.f32 %v305_v60, %v177_v28  ;;  %v230_v63 = vadd.f32 %v265_v52, %v221_v59 }
 0x231   :  { %v231_v0 = vadd.f32 %v265_v52, %v222_v61 }
 0x232   :  { %v223_v1 = vmul.f32 %v264_v50, %v214_v62  ;;  %234 = vst [vmem:[#allocation8 + $0x8] sm:$0xff] %v230_v63 }
 0x233   :  { %235 = vst [vmem:[#allocation8 + $0x10] sm:$0xff] %v231_v0 }
 0x234   :  { %v232_v2 = vadd.f32 %v265_v52, %v223_v1 }
 0x236   :  { %236 = vst [vmem:[#allocation8 + $0x18] sm:$0xff] %v232_v2 }
 0x237   :  { %377 = shalt.err (!%p374_p5)
}
 0x238   :  { %s398_s29 = smov 128   ;;  %s399_s30 = smov 8  }
 0x239   :  { %248 = dma.vmem_to_hbm [thread:$0]  %s243_s2, 512, %s435_s3, [#allocation4], %s398_s29, %s398_s29, %s399_s30  }
 0x23a   :  { %390 = dma.done.wait [#allocation4], 512  }
 0x23b   :  { %391 = vsyncadd [#allocation4], 4294966784 }
 0x23c   :  { %252 = vsyncpa [#allocation3], 1 }
 0x23d   :  { %253 = vsyncpa [#allocation6], 1 }
 0x23e   :  { %254 = vsyncpa [#allocation4], 1 }

// kernel: tpu_custom_call.1
= control target key start
LH: loop header
LB: loop body
LE: loop exit
PB: predicated region body
PF: predicated region fallthrough
CT: control target
= control target key end

     0   :  { %8 = vsyncpa [#allocation3], 0  ;;  %s432_s0 = inlined_call_operand.hbm [shape: bf16[32,64], index: 0, kind: input, shape index: {}]   ;;  %s433_s1 = inlined_call_operand.hbm [shape: bf16[64,128], index: 1, kind: input, shape index: {}]   ;;  %s434_s2 = inlined_call_operand.hbm [shape: f32[8,128], index: 2, kind: input, shape index: {}]   ;;  %s435_s3 = inlined_call_operand.hbm [shape: f32[32,128], index: 3, kind: output, shape index: {}]  }
   0x1   :  { %9 = vsyncpa [#allocation6], 0 }
   0x2   :  { %10 = vsyncpa [#allocation4], 0  ;;  %s392_s12 = smov [#allocation5]   ;;  %s393_s14 = smov [#allocation2]  }
   0x3   :  { %s28_s13 = sshll.u32 %s392_s12, 4  ;;  %s16_s15 = sshll.u32 %s393_s14, 4  ;;  %s29_s13 = int_to_ptr.vmem [resolvable:$true] %s28_s13  ;;  %s17_s15 = int_to_ptr.vmem [resolvable:$true] %s16_s15 }
   0x4   :  { %s314_s16 = scalar_lea.vmem %s29_s13, 512  ;;  %p319_p1 = scmp.lt.s32.totalorder %s29_s13, %s29_s13 }
   0x5   :  { %p315_p0 = scmp.ne.s32.totalorder %s29_s13, %s314_s16  ;;  %p320_p2 = scmp.lt.s32.totalorder %s314_s16, %s314_s16 }
   0x7   :  { %p321_p3 = por %p320_p2, %p319_p1 }
   0x9   :  { %p322_p4 = pnand %p321_p3, %p315_p0 }
   0xb   :  { %325 = shalt.err (!%p322_p4)
}
   0xc   :  { %s394_s17 = smov 64   ;;  %s395_s18 = smov 4  }
   0xd   :  { %34 = dma.hbm_to_vmem [thread:$0]  %s433_s1, 512, %s29_s13, [#allocation6], %s394_s17, %s394_s17, %s395_s18  }
   0xe   :  { %s334_s21 = scalar_lea.vmem %s17_s15, 256  ;;  %p339_p6 = scmp.lt.s32.totalorder %s17_s15, %s17_s15 }
   0xf   :  { %p335_p5 = scmp.ne.s32.totalorder %s17_s15, %s334_s21  ;;  %p340_p7 = scmp.lt.s32.totalorder %s334_s21, %s334_s21 }
  0x11   :  { %p341_p8 = por %p340_p7, %p339_p6 }
  0x13   :  { %p342_p9 = pnand %p341_p8, %p335_p5 }
  0x15   :  { %345 = shalt.err (!%p342_p9)
}
  0x16   :  { %22 = dma.hbm_to_vmem [thread:$0]  %s432_s0, 256, %s17_s15, [#allocation3], %s394_s17, %s394_s17, %s395_s18  }
  0x17   :  { %s396_s24 = smov [#allocation7]  }
  0x18   :  { %s41_s25 = sshll.u32 %s396_s24, 4  ;;  %s42_s25 = int_to_ptr.vmem [resolvable:$true] %s41_s25 }
  0x19   :  { %s354_s26 = scalar_lea.vmem %s42_s25, 128  ;;  %p359_p11 = scmp.lt.s32.totalorder %s42_s25, %s42_s25 }
  0x1a   :  { %p355_p10 = scmp.ne.s32.totalorder %s42_s25, %s354_s26  ;;  %p360_p12 = scmp.lt.s32.totalorder %s354_s26, %s354_s26 }
  0x1c   :  { %p361_p13 = por %p360_p12, %p359_p11 }
  0x1e   :  { %p362_p0 = pnand %p361_p13, %p355_p10 }
  0x20   :  { %365 = shalt.err (!%p362_p0)
}
  0x21   :  { %44 = dma.hbm_to_vmem [thread:$0]  %s434_s2, 128, %s42_s25, [#allocation6]  }
  0x22   :  { %386 = dma.done.wait [#allocation3], 256  }
  0x23   :  { %387 = vsyncadd [#allocation3], 4294967040 }
  0x24   :  { %388 = dma.done.wait [#allocation6], 640  }
  0x25   :  { %389 = vsyncadd [#allocation6], 4294966656  ;;  %v292_v0 = vld [vmem:[#allocation5 + $0x18] sm:$0xff]   ;;  %v293_v1 = vld [vmem:[#allocation5 + $0x10] sm:$0xff]   ;;  %vm106_vm0 = vcmask 523264   ;;  %v178_v16 = vlaneseq  ;;  %s397_s0 = smov [#allocation8]  }
  0x26   :  { %272 = vmatprep.subr.bf16.mxu0 %v292_v0  ;;  %v294_v2 = vld [vmem:[#allocation5 + $0x8] sm:$0xff]   ;;  %v296_v3 = vld [vmem:[#allocation2] sm:$0xff]   ;;  %v295_v4 = vld [vmem:[#allocation5] sm:$0xff]   ;;  %s242_s2 = sshll.u32 %s397_s0, 4  ;;  %s243_s2 = int_to_ptr.vmem [resolvable:$true] %s242_s2 }
  0x27   :  { %273 = vmatpush3.bf16.msra.mxu0 %v292_v0  ;;  %280 = vmatprep.mubr.msk.bf16.mxu0 %vm106_vm0, %v296_v3  ;;  %v297_v5 = vld [vmem:[#allocation2 + $0x8] sm:$0xff]   ;;  %v255_v6 = vld [vmem:[#allocation7] ss:$0 sm:$0xff]  ;;  %v179_v21 = vand.u32 127, %v178_v16  ;;  %v264_v50 = vld [vmem:[#allocation7 + $0x1] ss:$0 sm:$0xff]  ;;  %p371_p2 = scmp.lt.s32.totalorder %s243_s2, %s243_s2 }
  0x28   :  { %274 = vmatprep.subr.bf16.mxu0 %v293_v1  ;;  %v265_v52 = vld [vmem:[#allocation7 + $0x2] ss:$0 sm:$0xff]  ;;  %s366_s28 = scalar_lea.vmem %s243_s2, 512 }
  0x29   :  { %vm180_vm1 = vcmp.lt.s32.totalorder %v179_v21, 32  ;;  %p367_p1 = scmp.ne.s32.totalorder %s243_s2, %s366_s28  ;;  %p372_p3 = scmp.lt.s32.totalorder %s366_s28, %s366_s28 }
  0x2b   :  { %275 = vmatpush3.bf16.msra.mxu0 %v293_v1  ;;  %p373_p4 = por %p372_p3, %p371_p2 }
  0x2c   :  { %276 = vmatprep.subr.bf16.mxu0 %v294_v2 }
  0x2d   :  { %p374_p5 = pnand %p373_p4, %p367_p1 }
  0x2f   :  { %277 = vmatpush3.bf16.msra.mxu0 %v294_v2 }
  0x30   :  { %278 = vmatprep.subr.bf16.mxu0 %v295_v4 }
  0x33   :  { %279 = vmatpush3.bf16.msra.mxu0 %v295_v4 }
  0x36   :  { %281 = vmatmul.mubr.msk.bf16.vlgmr.msra.gmra.mxu0 %vm106_vm0, %v297_v5 }
  0xf6   :  { %v282_v7 = vpop.f32.mrf.mxu0 }
  0xf7   :  { %v156_v8 = vadd.f32 %v282_v7, %v255_v6 }
  0xf8   :  { %v147_v9 = vpop.f32.mrf.mxu0 }
  0xf9   :  { %v148_v10 = vadd.f32 %v255_v6, %v147_v9  ;;  %166 = vadd.xlane.f32.xlu1 %v156_v8 }
  0xfa   :  { %v283_v11 = vpop.f32.mrf.mxu0 }
  0xfb   :  { %v159_v12 = vadd.f32 %v283_v11, %v255_v6  ;;  %162 = vadd.xlane.f32.xlu0 %v148_v10 }
  0xfc   :  { %v150_v13 = vpop.f32.mrf.mxu0 }
  0xfd   :  { %v151_v14 = vadd.f32 %v255_v6, %v150_v13  ;;  %168 = vadd.xlane.f32.xlu1 %v159_v12 }
  0xff   :  { %164 = vadd.xlane.f32.xlu0 %v151_v14 }
 0x182   :  { %v167_v15 = vpop.xlane.xlu1 %166 }
 0x183   :  { %v172_v17 = vmul.f32 0.03125, %v167_v15 }
 0x184   :  { %v163_v18 = vpop.xlane.xlu0 %162 }
 0x185   :  { %v170_v19 = vmul.f32 0.03125, %v163_v18  ;;  %v176_v22 = vsub.f32 %v156_v8, %v172_v17 }
 0x186   :  { %v169_v20 = vpop.xlane.xlu1 %168 }
 0x187   :  { %v174_v23 = vsub.f32 %v148_v10, %v170_v19  ;;  %v173_v24 = vmul.f32 0.03125, %v169_v20  ;;  %v183_v31 = vmul.f32 %v176_v22, %v176_v22 }
 0x188   :  { %v165_v25 = vpop.xlane.xlu0 %164 }
 0x189   :  { %v171_v26 = vmul.f32 0.03125, %v165_v25  ;;  %v181_v27 = vmul.f32 %v174_v23, %v174_v23  ;;  %v177_v28 = vsub.f32 %v159_v12, %v173_v24  ;;  %v189_v33 = vsel %vm180_vm1, %v183_v31, 0.0 }
 0x18b   :  { %v175_v29 = vsub.f32 %v151_v14, %v171_v26  ;;  %v187_v30 = vsel %vm180_vm1, %v181_v27, 0.0  ;;  %v184_v35 = vmul.f32 %v177_v28, %v177_v28 }
 0x18c   :  { %191 = vadd.xlane.f32.xlu0 %v187_v30 }
 0x18d   :  { %v182_v32 = vmul.f32 %v175_v29, %v175_v29  ;;  %v190_v36 = vsel %vm180_vm1, %v184_v35, 0.0 }
 0x18f   :  { %v188_v34 = vsel %vm180_vm1, %v182_v32, 0.0 }
 0x190   :  { %195 = vadd.xlane.f32.xlu0 %v189_v33  ;;  %193 = vadd.xlane.f32.xlu1 %v188_v34 }
 0x194   :  { %197 = vadd.xlane.f32.xlu1 %v190_v36 }
 0x215   :  { %v192_v37 = vpop.xlane.xlu0 %191 }
 0x216   :  { %v199_v38 = vmul.f32 0.03125, %v192_v37 }
 0x218   :  { %v203_v39 = vadd.f32 1e-05, %v199_v38 }
 0x219   :  { %v194_v40 = vpop.xlane.xlu1 %193  ;;  %v196_v41 = vpop.xlane.xlu0 %195 }
 0x21a   :  { %298 = vrsqrt.f32 %v203_v39  ;;  %v200_v42 = vmul.f32 0.03125, %v194_v40  ;;  %v201_v43 = vmul.f32 0.03125, %v196_v41 }
 0x21c   :  { %v204_v44 = vadd.f32 1e-05, %v200_v42  ;;  %v205_v45 = vadd.f32 1e-05, %v201_v43 }
 0x21d   :  { %v198_v46 = vpop.xlane.xlu1 %197 }
 0x21e   :  { %300 = vrsqrt.f32 %v204_v44  ;;  %v202_v47 = vmul.f32 0.03125, %v198_v46 }
 0x21f   :  { %302 = vrsqrt.f32 %v205_v45 }
 0x220   :  { %v206_v48 = vadd.f32 1e-05, %v202_v47 }
 0x222   :  { %304 = vrsqrt.f32 %v206_v48 }
 0x227   :  { %v299_v49 = vpop.eup %298 }
 0x228   :  { %v211_v51 = vmul.f32 %v299_v49, %v174_v23 }
 0x22a   :  { %v220_v53 = vmul.f32 %v264_v50, %v211_v51 }
 0x22b   :  { %v301_v54 = vpop.eup %300 }
 0x22c   :  { %v303_v55 = vpop.eup %302  ;;  %v212_v56 = vmul.f32 %v301_v54, %v175_v29  ;;  %v229_v57 = vadd.f32 %v265_v52, %v220_v53 }
 0x22d   :  { %v213_v58 = vmul.f32 %v303_v55, %v176_v22 }
 0x22e   :  { %v221_v59 = vmul.f32 %v264_v50, %v212_v56  ;;  %233 = vst [vmem:[#allocation8] sm:$0xff] %v229_v57 }
 0x22f   :  { %v305_v60 = vpop.eup %304  ;;  %v222_v61 = vmul.f32 %v264_v50, %v213_v58 }
 0x230   :  { %v214_v62 = vmul.f32 %v305_v60, %v177_v28  ;;  %v230_v63 = vadd.f32 %v265_v52, %v221_v59 }
 0x231   :  { %v231_v0 = vadd.f32 %v265_v52, %v222_v61 }
 0x232   :  { %v223_v1 = vmul.f32 %v264_v50, %v214_v62  ;;  %234 = vst [vmem:[#allocation8 + $0x8] sm:$0xff] %v230_v63 }
 0x233   :  { %235 = vst [vmem:[#allocation8 + $0x10] sm:$0xff] %v231_v0 }
 0x234   :  { %v232_v2 = vadd.f32 %v265_v52, %v223_v1 }
 0x236   :  { %236 = vst [vmem:[#allocation8 + $0x18] sm:$0xff] %v232_v2 }
 0x237   :  { %377 = shalt.err (!%p374_p5)
}
 0x238   :  { %s398_s29 = smov 128   ;;  %s399_s30 = smov 8  }
 0x239   :  { %248 = dma.vmem_to_hbm [thread:$0]  %s243_s2, 512, %s435_s3, [#allocation4], %s398_s29, %s398_s29, %s399_s30  }
 0x23a   :  { %390 = dma.done.wait [#allocation4], 512  }
 0x23b   :  { %391 = vsyncadd [#allocation4], 4294966784 }
 0x23c   :  { %252 = vsyncpa [#allocation3], 1 }
 0x23d   :  { %253 = vsyncpa [#allocation6], 1 }
 0x23e   :  { %254 = vsyncpa [#allocation4], 1 }

</bundles_post_ra>
